<compile_context>
chip_gen: v5e
topology: v5e:2x2
jax: 0.10.0
libtpu: 0.0.40
codegen_flags: <defaults>
</compile_context>

<pallas_src>
import functools
from typing import Dict

import jax
import jax.numpy as jnp
from jax.experimental import pallas as pl
from jax.experimental.pallas import tpu as pltpu


def _round_up(x: int, m: int) -> int:
    return ((x + m - 1) // m) * m


def _choose_tm(bn: int, p: int, d: int, *, target: int = 1024,
               vmem_budget: int = 44 * 1024 * 1024) -> int:
    """Row tile: prefer an exact divisor of bn (no row padding), as coarse as
    possible (multiple of 256 -> 128 -> 16 -> 8), capped so the per-step
    working set fits comfortably in VMEM and the grid keeps >= 2 steps."""

    def working_set(tm: int) -> int:
        return (2 * tm * p * 2      # patches tile (bf16, double-buffered)
                + 2 * tm * d * 2    # output tile (bf16, double-buffered)
                + 2 * tm * 4        # mask tile (f32, double-buffered)
                + 2 * p * d * 2     # weight (worst case double-buffered)
                + 4 * d * 4)        # bias + token

    cap = min(target, bn)
    while cap > 128 and working_set(cap) > vmem_budget:
        cap //= 2
    if bn >= 16:
        cap = min(cap, max(8, bn // 2))  # keep >= 2 grid steps (v7x: 2 TCs)
    cap = max(cap, 8)

    for gran in (256, 128, 16, 8):
        t = (cap // gran) * gran
        while t >= gran:
            if bn % t == 0:
                return t
            t -= gran
    # No clean divisor: fall back to a padded row count (rare).
    return max(8, (cap // 8) * 8)


def _vmem_limit_bytes(requested: int) -> int:
    """Generation-aware VMEM limit (v5e/v6e: 128 MiB physical, v7x: 64 MiB)."""
    try:
        capacity = int(pltpu.get_tpu_info().vmem_capacity_bytes)
    except Exception:
        capacity = 64 * 1024 * 1024  # conservative (v7x)
    headroom = 8 * 1024 * 1024       # Mosaic internal scratch
    hi = max(capacity - headroom, 32 * 1024 * 1024)
    return int(min(max(requested, 32 * 1024 * 1024), hi))


def _spec(shape, index_map, *, buffers=None):
    """BlockSpec helper; resident params request single-buffering if the
    running jax version supports pipeline_mode=pl.Buffered."""
    if buffers is not None:
        try:
            return pl.BlockSpec(shape, index_map,
                                pipeline_mode=pl.Buffered(buffers))
        except Exception:
            pass
    return pl.BlockSpec(shape, index_map)


# ----------------------------------------------------------------------------
# Pallas kernel: patch embedding (matmul + bias) fused with mask-token select.
# ----------------------------------------------------------------------------
def _mim_embed_kernel(patches_ref, w_ref, b_ref, mask_ref, token_ref, out_ref):
    # patches_ref: (TM, P)  bf16 -- flattened patch tile
    # w_ref:       (P, Dp)  bf16 -- patch-embedding projection (VMEM-resident)
    # b_ref:       (1, Dp)  f32  -- bias (VMEM-resident)
    # mask_ref:    (TM, 1)  f32  -- 1.0 where patch is masked
    # token_ref:   (1, Dp)  f32  -- learnable mask token (VMEM-resident)
    # out_ref:     (TM, Dp) bf16
    emb = jnp.dot(patches_ref[...], w_ref[...],
                  preferred_element_type=jnp.float32)
    emb = emb + b_ref[...]
    masked = mask_ref[...] > 0.5  # (TM, 1) broadcasts over Dp
    out_ref[...] = jnp.where(masked, token_ref[...], emb).astype(out_ref.dtype)


def mim_patch_embed(patches, w, b, mask, token, *, tm):
    """patches: (BN, P) bf16, w: (P, D) bf16, b/token: (1, D) f32,
    mask: (BN, 1) f32.  Requires BN % tm == 0, tm % 8 == 0, D % 128 == 0.
    P may be unaligned (the contraction block covers the full dim).
    Returns (BN, D) bf16."""
    bn, p = patches.shape
    d = w.shape[1]
    assert bn % tm == 0 and tm % 8 == 0 and d % 128 == 0
    grid = (bn // tm,)

    # Advisory cost estimate for the XLA scheduler.
    cost = pl.CostEstimate(
        flops=2 * bn * p * d,
        transcendentals=0,
        bytes_accessed=(bn * p * 2 + p * d * 2 + bn * d * 2
                        + bn * 4 + 2 * d * 4),
    )

    # Per-step working set (streamed tiles double-buffered + resident params).
    working_set = (2 * tm * p * 2 + 2 * tm * d * 2 + 2 * tm * 4
                   + 2 * p * d * 2 + 4 * d * 4)
    vmem_limit = _vmem_limit_bytes(2 * working_set)

    return pl.pallas_call(
        _mim_embed_kernel,
        out_shape=jax.ShapeDtypeStruct((bn, d), jnp.bfloat16),
        grid_spec=pltpu.PrefetchScalarGridSpec(
            num_scalar_prefetch=0,
            grid=grid,
            in_specs=[
                _spec((tm, p), lambda i: (i, 0)),             # patches: tiled
                _spec((p, d), lambda i: (0, 0), buffers=1),   # weight: resident
                _spec((1, d), lambda i: (0, 0), buffers=1),   # bias: resident
                _spec((tm, 1), lambda i: (i, 0)),             # mask: tiled
                _spec((1, d), lambda i: (0, 0), buffers=1),   # token: resident
            ],
            out_specs=pl.BlockSpec((tm, d), lambda i: (i, 0)),
        ),
        compiler_params=pltpu.CompilerParams(
            dimension_semantics=("parallel",),
            vmem_limit_bytes=vmem_limit,
        ),
        cost_estimate=cost,
    )(patches, w, b, mask, token)


# ----------------------------------------------------------------------------
# Jitted forward glue: patchify + kernel + un-pad (all fused under jit).
# ----------------------------------------------------------------------------
@functools.partial(jax.jit, static_argnums=(5, 6, 7))
def _mim_forward(x, mask, w_pad, b_pad, token_pad, patch_size, embed_dim, tm):
    B, C, H, W = x.shape
    P = patch_size
    hp, wp = H // P, W // P
    num_patches = hp * wp
    bn = B * num_patches
    patch_dim = C * P * P
    bn_pad = _round_up(bn, tm)

    # NCHW -> (B*num_patches, C*P*P), row-major over (B, hp, wp), bf16.
    # TODO(synk): this transpose is one extra XLA HBM pass; an in-kernel patch
    # gather (memory_space=pl.ANY) or NHWC input would remove it.
    patches = x.reshape(B, C, hp, P, wp, P)
    patches = jnp.transpose(patches, (0, 2, 4, 1, 3, 5))
    patches = patches.reshape(bn, patch_dim).astype(jnp.bfloat16)

    mask_flat = mask.reshape(bn, 1).astype(jnp.float32)

    if bn_pad != bn:  # rare fallback; tm is normally an exact divisor of bn
        patches = jnp.pad(patches, ((0, bn_pad - bn), (0, 0)))
        mask_flat = jnp.pad(mask_flat, ((0, bn_pad - bn), (0, 0)))

    emb = mim_patch_embed(patches, w_pad, b_pad, mask_flat, token_pad, tm=tm)
    emb = emb[:bn, :embed_dim].reshape(B, num_patches, embed_dim)
    return {"embeddings": emb, "mask": mask}


# ----------------------------------------------------------------------------
# MIMBaseNet-like wrapper.
# ----------------------------------------------------------------------------
class MIMBaseNetPallas:
    default_size = (16, 16)
    task = "masked_image_modeling"

    def __init__(self, input_channels: int, patch_size: int, embed_dim: int,
                 size=None):
        self.input_channels = input_channels
        self.patch_size = patch_size
        self.embed_dim = embed_dim
        self.size = size if size is not None else self.default_size
        assert isinstance(self.size, tuple)
        assert isinstance(self.size[0], int)
        assert isinstance(self.size[1], int)

        # Deterministic parameter init (synthetic, no checkpoint).
        patch_dim = input_channels * patch_size * patch_size
        d_pad = _round_up(embed_dim, 128)
        kw, kt = jax.random.split(jax.random.PRNGKey(42), 2)

        w = jax.random.normal(kw, (patch_dim, embed_dim), jnp.float32) * 0.02
        token = jax.random.normal(kt, (1, embed_dim), jnp.float32) * 0.02

        # Unpadded f32 copies (reference / export).
        self.w = w
        self.b = jnp.zeros((1, embed_dim), jnp.float32)
        self.mask_token = token

        # Kernel-side lane-dense params (embed dim padded to 128; no K pad).
        self.w_pad = jnp.pad(
            w, ((0, 0), (0, d_pad - embed_dim))
        ).astype(jnp.bfloat16)
        self.b_pad = jnp.zeros((1, d_pad), jnp.float32)
        self.token_pad = jnp.pad(
            token, ((0, 0), (0, d_pad - embed_dim))
        ).astype(jnp.float32)

    def _patchify(self, x):
        # Reference-only (plain JAX) patchify: (B,C,H,W) -> (B*N, C*P*P).
        B, C, H, W = x.shape
        P = self.patch_size
        x = x.reshape(B, C, H // P, P, W // P, P)
        x = jnp.transpose(x, (0, 2, 4, 1, 3, 5))
        return x.reshape(B * (H // P) * (W // P), C * P * P)

    def forward(self, x, mask) -> Dict[str, jnp.ndarray]:
        # x: (B, C, H, W), mask: (B, num_patches) with 1.0 = masked
        B, C, H, W = x.shape
        assert C == self.input_channels
        patch_dim = C * self.patch_size * self.patch_size
        bn = B * (H // self.patch_size) * (W // self.patch_size)
        tm = _choose_tm(bn, patch_dim, self.w_pad.shape[1])
        return _mim_forward(x, mask, self.w_pad, self.b_pad, self.token_pad,
                            self.patch_size, self.embed_dim, tm)


if __name__ == "__main__":
    B, C, H, W = 2, 4, 16, 16
    patch_size = 4
    embed_dim = 32

    key = jax.random.PRNGKey(0)
    kx, _ = jax.random.split(key)
    x = jax.random.normal(kx, (B, C, H, W), jnp.float32)

    num_patches = (H // patch_size) * (W // patch_size)
    # Deterministic checkerboard mask: mask every other patch.
    mask = (jnp.arange(B * num_patches) % 2).reshape(B, num_patches)
    mask = mask.astype(jnp.float32)

    net = MIMBaseNetPallas(input_channels=C, patch_size=patch_size,
                           embed_dim=embed_dim, size=(H, W))
    out = net.forward(x, mask)
    jax.block_until_ready(out["embeddings"])

    # Correctness check against plain-JAX reference (same bf16-cast inputs;
    # tolerance relaxed for the bf16 output cast).
    patches = net._patchify(x)
    p_bf = patches.astype(jnp.bfloat16).astype(jnp.float32)
    w_bf = net.w.astype(jnp.bfloat16).astype(jnp.float32)
    ref = p_bf @ w_bf + net.b
    ref = jnp.where(mask.reshape(-1, 1) > 0.5, net.mask_token, ref)
    ref = ref.reshape(B, num_patches, embed_dim)
    got = out["embeddings"].astype(jnp.float32)
    assert jnp.allclose(got, ref, atol=1e-2, rtol=1e-2), (
        float(jnp.max(jnp.abs(got - ref)))
    )

    print("KERNEL_OK")
</pallas_src>

<mosaic_0001>
module attributes {stable_mosaic.version = 11 : i64} {
  func.func @_mim_embed_kernel(%arg0: i32, %arg1: memref<16x64xbf16, #tpu.memory_space<vmem>>, %arg2: memref<64x128xbf16, #tpu.memory_space<vmem>>, %arg3: memref<1x128xf32, #tpu.memory_space<vmem>>, %arg4: memref<16x1xf32, #tpu.memory_space<vmem>>, %arg5: memref<1x128xf32, #tpu.memory_space<vmem>>, %arg6: memref<16x128xbf16, #tpu.memory_space<vmem>>) attributes {dimension_semantics = [#tpu.dimension_semantics<parallel>], iteration_bounds = array<i64: 2>, scalar_prefetch = 0 : i64, scratch_operands = 0 : i64, tpu.core_type = #tpu.core_type<tc>, window_params = [{transform_indices = @transform_0, window_bounds = array<i64: 16, 64>}, {pipeline_mode = #tpu.pipeline_mode<synchronous>, transform_indices = @transform_1, window_bounds = array<i64: 64, 128>}, {pipeline_mode = #tpu.pipeline_mode<synchronous>, transform_indices = @transform_2, window_bounds = array<i64: 1, 128>}, {transform_indices = @transform_3, window_bounds = array<i64: 16, 1>}, {pipeline_mode = #tpu.pipeline_mode<synchronous>, transform_indices = @transform_4, window_bounds = array<i64: 1, 128>}, {transform_indices = @transform_5, window_bounds = array<i64: 16, 128>}]} {
    %c0 = arith.constant 0 : index
    %c0_0 = arith.constant 0 : index
    %0 = vector.load %arg1[%c0, %c0_0] : memref<16x64xbf16, #tpu.memory_space<vmem>>, vector<16x64xbf16>
    %c0_1 = arith.constant 0 : index
    %c0_2 = arith.constant 0 : index
    %1 = vector.load %arg2[%c0_1, %c0_2] : memref<64x128xbf16, #tpu.memory_space<vmem>>, vector<64x128xbf16>
    %cst = arith.constant dense<0.000000e+00> : vector<16x128xf32>
    %2 = tpu.matmul %0, %1, %cst {dimension_numbers = #tpu.dot_dimension_numbers<[1], [0], [0], [1], [0, 0, 1, 1], [], []>} : vector<16x64xbf16>, vector<64x128xbf16>, vector<16x128xf32> -> vector<16x128xf32>
    %c0_3 = arith.constant 0 : index
    %c0_4 = arith.constant 0 : index
    %3 = vector.load %arg3[%c0_3, %c0_4] : memref<1x128xf32, #tpu.memory_space<vmem>>, vector<1x128xf32>
    %4 = vector.broadcast %3 : vector<1x128xf32> to vector<16x128xf32>
    %5 = arith.addf %2, %4 : vector<16x128xf32>
    %c0_5 = arith.constant 0 : index
    %c0_6 = arith.constant 0 : index
    %6 = vector.load %arg4[%c0_5, %c0_6] : memref<16x1xf32, #tpu.memory_space<vmem>>, vector<16x1xf32>
    %cst_7 = arith.constant 5.000000e-01 : f32
    %7 = vector.broadcast %cst_7 : f32 to vector<16x1xf32>
    %8 = arith.cmpf ogt, %6, %7 : vector<16x1xf32>
    %c0_8 = arith.constant 0 : index
    %c0_9 = arith.constant 0 : index
    %9 = vector.load %arg5[%c0_8, %c0_9] : memref<1x128xf32, #tpu.memory_space<vmem>>, vector<1x128xf32>
    %10 = vector.shape_cast %8 : vector<16x1xi1> to vector<16x1xi1>
    %11 = vector.broadcast %10 : vector<16x1xi1> to vector<16x128xi1>
    %12 = vector.shape_cast %9 : vector<1x128xf32> to vector<1x128xf32>
    %13 = vector.broadcast %12 : vector<1x128xf32> to vector<16x128xf32>
    %14 = arith.select %11, %13, %5 : vector<16x128xi1>, vector<16x128xf32>
    %15 = arith.truncf %14 : vector<16x128xf32> to vector<16x128xbf16>
    %c0_10 = arith.constant 0 : index
    %c0_11 = arith.constant 0 : index
    %16 = vector.load %arg6[%c0_10, %c0_11] : memref<16x128xbf16, #tpu.memory_space<vmem>>, vector<16x128xbf16>
    tpu.vector_store %arg6[%c0_10, %c0_11], %15 {strides = array<i32>} : memref<16x128xbf16, #tpu.memory_space<vmem>>, vector<16x128xbf16>,
    return
  }
  func.func @transform_0(%arg0: i32) -> (i32, i32) {
    %c0_i32 = arith.constant 0 : i32
    %c0_i32_0 = arith.constant 0 : i32
    return %arg0, %c0_i32 : i32, i32
  }
  func.func @transform_1(%arg0: i32) -> (i32, i32) {
    %c0_i32 = arith.constant 0 : i32
    %c0_i32_0 = arith.constant 0 : i32
    %c0_i32_1 = arith.constant 0 : i32
    return %c0_i32, %c0_i32_0 : i32, i32
  }
  func.func @transform_2(%arg0: i32) -> (i32, i32) {
    %c0_i32 = arith.constant 0 : i32
    %c0_i32_0 = arith.constant 0 : i32
    %c0_i32_1 = arith.constant 0 : i32
    return %c0_i32, %c0_i32_0 : i32, i32
  }
  func.func @transform_3(%arg0: i32) -> (i32, i32) {
    %c0_i32 = arith.constant 0 : i32
    %c0_i32_0 = arith.constant 0 : i32
    return %arg0, %c0_i32 : i32, i32
  }
  func.func @transform_4(%arg0: i32) -> (i32, i32) {
    %c0_i32 = arith.constant 0 : i32
    %c0_i32_0 = arith.constant 0 : i32
    %c0_i32_1 = arith.constant 0 : i32
    return %c0_i32, %c0_i32_0 : i32, i32
  }
  func.func @transform_5(%arg0: i32) -> (i32, i32) {
    %c0_i32 = arith.constant 0 : i32
    %c0_i32_0 = arith.constant 0 : i32
    return %arg0, %c0_i32 : i32, i32
  }
}

</mosaic_0001>

<bundles_post_ra>
// kernel: _mim_forward.1
= control target key start
LH: loop header
LB: loop body
LE: loop exit
PB: predicated region body
PF: predicated region fallthrough
CT: control target
= control target key end

     0   :  { %10 = vsyncpa [#allocation3], 0  ;;  %s720_s0 = inlined_call_operand.vmem [shape: bf16[32,64], index: 0, kind: input, shape index: {}]   ;;  %s721_s1 = inlined_call_operand.vmem [shape: bf16[64,128], index: 1, kind: input, shape index: {}]   ;;  %s722_s2 = inlined_call_operand.vmem [shape: f32[1,128], index: 2, kind: input, shape index: {}]   ;;  %s723_s3 = inlined_call_operand.vmem [shape: f32[32,1], index: 3, kind: input, shape index: {}]   ;;  %s724_s4 = inlined_call_operand.vmem [shape: f32[1,128], index: 4, kind: input, shape index: {}]   ;;  %s725_s5 = inlined_call_operand.hbm [shape: bf16[32,128], index: 5, kind: output, shape index: {}]  }
   0x1   :  { %12 = vsyncpa [#allocation3 + $0x1], 0  ;;  %s612_s18 = smov 0   ;;  %s614_s19 = smov 0  }
   0x2   :  { %s616_s20 = smov 0   ;;  %s618_s21 = smov 0  }
   0x3 LB: > { %s633_s22 = sadd.s32 4294967295, %s577_s21   ;;  %s424_s23 = sadd.s32 4294967294, %s577_s21   ;;  %s577_s21 = sphi %s618_s21, %s731_s21   ;;  %s573_s20 = sphi %s616_s20, %s730_s20   ;;  %s569_s19 = sphi %s614_s19, %s729_s19   ;;  %s565_s18 = sphi %s612_s18, %s728_s18  }
   0x4   : > { %s637_s24 = sadd.s32 1, %s577_s21   ;;  %s140_s25 = sadd.s32 1, %s573_s20 }
   0x5   : > { %s137_s26 = ssub.s32 %s577_s21, %s637_s24  ;;  %p150_p0 = scmp.ne.s32.totalorder %s573_s20, %s569_s19 }
   0x6   : > { %p138_p1 = scmp.eq.s32.totalorder %s137_s26, 0  ;;  %p151_p2 = scmp.eq.s32.totalorder %s633_s22, 1 }
   0x7   : > { %p156_p3 = scmp.ne.s32.totalorder %s569_s19, %s565_s18  ;;  %p157_p4 = scmp.eq.s32.totalorder %s424_s23, 1 }
   0x8   : > { %s648_s27 = scalar_select %p138_p1, %s573_s20, %s140_s25  }
   0x9   : > { %p650_p5 = por %p151_p2, %p150_p0  ;;  %p654_p6 = por %p157_p4, %p156_p3 }
   0xa   : > { %p427_p7 = scmp.ge.s32.totalorder %s577_s21, 1  ;;  %p202_p8 = scmp.lt.s32.totalorder %s577_s21, 3 }
   0xc   : > { %p203_p9 = pnand %p427_p7, %p202_p8 }
   0xd   : > { %s429_s7 = sshll.u32 (!%p203_p9), %s633_s22, 1  ;;  %s232_s6 = sand.u32 (!%p203_p9), 1, %s569_s19  }
   0xe   : > { %206 = sbr.rel (%p203_p9) target bundleno = 178 (0xb2), region = 40  ;;  %p236_p10 = scmp.lt.s32.totalorder (!%p203_p9), %s429_s7, 3 }
   0xf   : > { %s464_s8 = sshll.u32 (!%p203_p9), %s633_s22, 3  ;;  %s335_s23 = scalar_lea.sflag (!%p203_p9), [#allocation3], %s232_s6 }
  0x10   : > { %s346_s13 = scalar_lea.hbm (!%p203_p9), %s725_s5, %s464_s8  ;;  %s535_s8 = scalar_lea.hbm (!%p203_p9), %s725_s5, 16 }
  0x11   : > { %s349_s22 = sshll.u32 (!%p203_p9), %s346_s13, 4  ;;  %s350_s22 = int_to_ptr.hbm [resolvable:$true] %s349_s22 }
  0x12   : > { %s529_s25 = sshra.s32 (!%p203_p9), %s350_s22, 4  ;;  %s530_s25 = int_to_ptr.hbm [resolvable:$true] %s529_s25 }
  0x13   : > { %v463_v0 = vld [vmem:[%s721_s1 + $0x18] sm:$0xff]  ;;  %v579_v1 = vmov 0   ;;  %v462_v2 = vld [vmem:[%s721_s1 + $0x10] sm:$0xff]  ;;  %s733_s7 = smov (!%p236_p10, %s429_s7), 3  ;;  %v461_v3 = vld [vmem:[%s721_s1 + $0x8] sm:$0xff]  ;;  %vm292_vm2 = vcmask 523264   ;;  %p536_p0 = scmp.lt.s32.totalorder %s530_s25, %s725_s5 }
  0x14   : > { %512 = vset.pattern.permute.xlu0 %v579_v1  ;;  %300 = vmatpush.bf16.msra.mxu0 %v463_v0  ;;  %s432_s10 = sshll.u32 %s733_s7, 3  ;;  %s430_s16 = sshll.u32 %s733_s7, 2  ;;  %v460_v7 = vld [vmem:[%s721_s1] sm:$0xff] }
  0x15   : > { %s245_s15 = scalar_lea.vmem %s723_s3, %s432_s10  ;;  %s239_s30 = scalar_lea.vmem %s720_s0, %s430_s16  ;;  %v513_v12 = vld [vmem:[%s722_s2] ss:$0 sm:$0xff] }
  0x16   : > { %v310_v4 = vld [vmem:[%s245_s15] sm:$0xff]  ;;  %v311_v6 = vld [vmem:[%s245_s15 + $0x8] sm:$0xff]  ;;  %s428_s7 = sshll.u32 %s232_s6, 3  ;;  %s531_s26 = scalar_lea.hbm %s530_s25, 8 }
  0x17   : > { %vm312_vm0 = vcmp.gt.f32.partialorder %v310_v4, 0.5  ;;  %vm313_vm1 = vcmp.gt.f32.partialorder %v311_v6, 0.5  ;;  %v459_v8 = vld [vmem:[%s239_s30] sm:$0xff]  ;;  %s234_s16 = scalar_lea.vmem [#allocation2], %s428_s7  ;;  %p532_p11 = scmp.ne.s32.totalorder %s530_s25, %s531_s26 }
  0x18   : > { %301 = vmatpush.bf16.msra.mxu0 %v462_v2  ;;  %v315_v5 = vsel %vm312_vm0, 1, %v579_v1  ;;  %v316_v9 = vsel %vm313_vm1, 1, %v579_v1  ;;  %v514_v14 = vld [vmem:[%s724_s4] ss:$0 sm:$0xff]  ;;  %s690_s17 = sshll.u32 %s234_s16, 4  ;;  %p537_p1 = scmp.lt.s32.totalorder %s535_s8, %s531_s26  ;;  %s348_s17 = int_to_ptr.vmem [resolvable:$true] %s690_s17 }
  0x19   : > { %318 = vperm.xlu0 %512, %v315_v5   ;;  %p533_p12 = pnand %p532_p11, %p650_p5 }
  0x1a   : > { %p538_p2 = por %p537_p1, %p536_p0 }
  0x1b   : > { %p534_p13 = pneg %p533_p12 }
  0x1c   : > { %302 = vmatpush.bf16.msra.mxu0 %v461_v3 }
  0x1d   : > { %p539_p3 = pnand %p538_p2, %p534_p13 }
  0x20   : > { %303 = vmatpush.bf16.msra.mxu0 %v460_v7 }
  0x21   : > { %321 = vperm.xlu0 %512, %v316_v9  }
  0x23   : > { %453 = vmatmul.msk.bf16.vlgmr.msra.gmra.mxu0 %vm292_vm2, %v459_v8 }
  0x8b   : > { %v319_v10 = vpop.permute.xlu0 %318 }
  0x8c   : > { %vm323_vm3 = vcmp.eq.s32.totalorder %v319_v10, 1 }
  0x93   : > { %v322_v15 = vpop.permute.xlu0 %321 }
  0x94   : > { %vm324_vm4 = vcmp.eq.s32.totalorder %v322_v15, 1 }
  0xa0   : > { %v305_v11 = vpop.f32.mrf.mxu0 }
  0xa1   : > { %v306_v13 = vadd.f32 %v513_v12, %v305_v11 }
  0xa3   : > { %v328_v18 = vsel %vm323_vm3, %v514_v14, %v306_v13 }
  0xa8   : > { %v307_v16 = vpop.f32.mrf.mxu0 }
  0xa9   : > { %v308_v17 = vadd.f32 %v513_v12, %v307_v16 }
  0xab   : > { %v329_v19 = vsel %vm324_vm4, %v514_v14, %v308_v17 }
  0xac   : > { %v468_v20 = vpack.c.bf16 %v329_v19, %v328_v18 }
  0xae   : > { %469 = vst [vmem:[%s234_s16] sm:$0xff] %v468_v20  }
  0xaf   : > { %542 = shalt.err (!%p539_p3)
}
  0xb0   : > { %s580_s6 = smov 64   ;;  %s581_s11 = smov 4  }
  0xb1   : > { %470 = dma.vmem_to_hbm [thread:$0]  (%p650_p5), %s348_s17, 128, %s350_s22, %s335_s23, %s580_s6, %s580_s6, %s581_s11  }
  0xb2 PF: > { %p476_p4 = scmp.ge.s32.totalorder %s577_s21, 2  ;;  %s364_s12 = sand.u32 1, %s565_s18  }
  0xb3   : > { %s365_s13 = scalar_lea.sflag [#allocation3], %s364_s12 }
  0xb4   : > { %p473_p7 = pnand %p476_p4, %p654_p6 }
  0xb6   : > { %p474_p8 = pneg %p473_p7 }
  0xb8   : > { %560 = dma.done.wait (%p474_p8), %s365_s13, 128  }
  0xb9   : > { %562 = vsyncadd (%p474_p8), %s365_s13, 4294967168  ;;  %p15_p9 = scmp.ge.s32.totalorder %s637_s24, 4   ;;  %s728_s18 = smov %s569_s19 }
  0xba   : > { %s729_s19 = smov %s573_s20  ;;  %s730_s20 = smov %s648_s27 }
  0xbb   : > { %s731_s21 = smov %s637_s24  ;;  %17 = sbr.rel (!%p15_p9) target bundleno = 3 (0x3), region = 78 }
  0xc0   :  { %371 = vsyncpa [#allocation3], 1 }
  0xc1   :  { %373 = vsyncpa [#allocation3 + $0x1], 1 }

</bundles_post_ra>
